<compile_context>
chip_gen: v7x
topology: tpu7x:2x2x1
jax: 0.10.0
libtpu: 0.0.40
codegen_flags: <defaults>
</compile_context>

<pallas_src>
import functools
import math

import jax
import jax.numpy as jnp
from jax import lax
from jax.experimental import pallas as pl
from jax.experimental.pallas import tpu as pltpu

SQRT2_OVER_4 = math.sqrt(2.0) / 4.0


def _to_2tuple(x):
    if isinstance(x, (tuple, list)):
        return tuple(x)
    return (x, x)


def _round_up(v, m):
    return ((v + m - 1) // m) * m


def _cdiv(a, b):
    return (a + b - 1) // b


def _vmem_cap_bytes():
    """Physical VMEM per TensorCore (generation-aware, with a safe fallback)."""
    try:
        info = pltpu.get_tpu_info()
        cap = getattr(info, "vmem_capacity_bytes", None)
        if cap:
            return int(cap)
    except Exception:
        pass
    return 64 << 20  # conservative: v7x per-TC capacity


# ----------------------------------------------------------------------------
# Weight expansion (D8 irrep symmetrization) -- small, pure-JAX glue.
# ----------------------------------------------------------------------------
def expand_weight(weight, irrep):
    """weight: (Cout, Cin, k//2, k//2) -> (Cout, Cin, k, k)."""
    if irrep == "E":
        w = 0.5 * weight
        w2 = jnp.concatenate([w, jnp.flip(w, axis=-2)], axis=-2)
        return jnp.concatenate([w2, -jnp.flip(w2, axis=-1)], axis=-1)
    w = SQRT2_OVER_4 * weight
    w_rot = jnp.rot90(w, k=1, axes=(-2, -1))
    w_rot2 = jnp.rot90(w, k=2, axes=(-2, -1))
    w_rot3 = jnp.rot90(w, k=3, axes=(-2, -1))
    if irrep in ("A1", "A2"):
        wcat = jnp.concatenate(
            [jnp.concatenate([w, w_rot], axis=-2),
             jnp.concatenate([w_rot3, w_rot2], axis=-2)], axis=-1)
    else:  # B1, B2
        wcat = jnp.concatenate(
            [jnp.concatenate([w, -w_rot], axis=-2),
             jnp.concatenate([-w_rot3, w_rot2], axis=-2)], axis=-1)
    if irrep in ("A1", "B1"):
        return wcat + jnp.flip(wcat, axis=-1)
    return wcat - jnp.flip(wcat, axis=-1)


# ----------------------------------------------------------------------------
# Pallas kernel: lane-dense tiled GEMM + bias (the conv hot path after im2col).
# ----------------------------------------------------------------------------
def _gemm_bias_kernel(p_ref, w_ref, b_ref, o_ref, *, precision):
    acc = jnp.dot(p_ref[...], w_ref[...],
                  preferred_element_type=jnp.float32, precision=precision)
    o_ref[...] = (acc + b_ref[...]).astype(o_ref.dtype)


def _gemm_bias_pallas(patches, wmat, bvec, out_dtype, *, precision):
    """(M, Kd) @ (Kd, Cout_total) + bias -> (M, Cout_total padded to 128 lanes).

    * patches are consumed as-is: no Kd pad (block last dim == full array dim)
      and no M pad (ragged last tile handled by Pallas boundary masking).
    * weight/bias (tiny) are zero-padded on the lane dim for unmasked stores.
    * balanced M tiles, resident weight/bias blocks, parallel M grid axis.
    """
    m, kd = patches.shape
    cout_total = wmat.shape[1]
    cout_p = _round_up(cout_total, 128)

    wmat_p = jnp.pad(wmat, ((0, 0), (0, cout_p - cout_total)))
    bvec_p = jnp.pad(bvec, ((0, 0), (0, cout_p - cout_total))).astype(jnp.float32)

    isz = patches.dtype.itemsize
    wsz = wmat_p.dtype.itemsize
    osz = jnp.dtype(out_dtype).itemsize

    # --- balanced M tiling ---------------------------------------------------
    MAX_TM = 1024
    MIN_STEPS = 4                      # pipeline depth; >=2 feeds both v7x TCs
    row_align = 8 if isz >= 4 else (16 if isz == 2 else 32)
    ntiles = max(_cdiv(m, MAX_TM), min(MIN_STEPS, _cdiv(m, row_align)))
    tm = _round_up(_cdiv(m, ntiles), row_align)
    if tm >= m:
        tm = m                         # single full-extent block (always legal)
    grid_m = _cdiv(m, tm)

    # VMEM: double-buffered patch + out tiles, resident weight + bias.
    vmem_need = (2 * tm * kd * isz + 2 * tm * cout_p * osz
                 + kd * cout_p * wsz + cout_p * 4)
    vmem_limit = int(min(max(2 * vmem_need, 16 << 20), _vmem_cap_bytes() // 2))

    cost = pl.CostEstimate(
        flops=2 * m * kd * cout_p,
        transcendentals=0,
        bytes_accessed=(m * kd * isz + kd * cout_p * wsz + cout_p * 4
                        + m * cout_p * osz),
    )

    kernel = functools.partial(_gemm_bias_kernel, precision=precision)

    return pl.pallas_call(
        kernel,
        out_shape=jax.ShapeDtypeStruct((m, cout_p), out_dtype),
        grid=(grid_m,),
        in_specs=[
            pl.BlockSpec((tm, kd), lambda i: (i, 0)),       # patch row tile
            pl.BlockSpec((kd, cout_p), lambda i: (0, 0)),   # resident weight
            pl.BlockSpec((1, cout_p), lambda i: (0, 0)),    # resident bias
        ],
        out_specs=pl.BlockSpec((tm, cout_p), lambda i: (i, 0)),
        compiler_params=pltpu.CompilerParams(
            dimension_semantics=("parallel",),
            vmem_limit_bytes=vmem_limit,
        ),
        cost_estimate=cost,
    )(patches, wmat_p, bvec_p)


# ----------------------------------------------------------------------------
# im2col (plain-JAX glue) with a patchify (stride == k) fast path.
# ----------------------------------------------------------------------------
def _im2col(x, k, stride):
    """x: (N, Cin, H, W) -> patches (N*OH*OW, Cin*k*k), column order (ci,kh,kw)."""
    n, cin, h, w = x.shape
    oh = (h - k) // stride + 1
    ow = (w - k) // stride + 1
    if stride == k and h % k == 0 and w % k == 0:
        # Patchify fast path: one reshape/transpose (single input relayout).
        # TODO(synk): for v5e this relayout can still dominate; moving the
        # patch gather into the kernel (grid over (M-tile, kh, kw)) would
        # remove it but needs an in-kernel cross-lane transpose.
        p = x.reshape(n, cin, oh, k, ow, k)
        p = p.transpose(0, 2, 4, 1, 3, 5).reshape(n * oh * ow, cin * k * k)
        return p, oh, ow
    cols = []
    for kh in range(k):
        for kw in range(k):
            cols.append(
                x[:, :,
                  kh:kh + (oh - 1) * stride + 1:stride,
                  kw:kw + (ow - 1) * stride + 1:stride])
    p = jnp.stack(cols, axis=2)                      # (N, Cin, k*k, OH, OW)
    p = p.reshape(n, cin * k * k, oh, ow)            # flatten (ci, kh, kw)
    p = p.transpose(0, 2, 3, 1).reshape(n * oh * ow, cin * k * k)
    return p, oh, ow


def conv2d_pallas(x, weights, bias, stride, *, compute_dtype=None,
                  out_layout="NCHW", precision=None):
    """Valid conv, NCHW input; all weights (OIHW) fused along Cout into one
    Pallas GEMM (patches read once).  Returns one output per weight."""
    n, cin, h, w = x.shape
    cout, _, k, _ = weights[0].shape
    patches, oh, ow = _im2col(x, k, stride)
    kd = cin * k * k
    nw = len(weights)

    cdt = jnp.dtype(compute_dtype) if compute_dtype is not None else x.dtype
    if precision is None:
        # Exact f32 MXU passes for the f32 path; DEFAULT for the optional
        # bandwidth-halving bf16 path.
        precision = (lax.Precision.HIGHEST if cdt == jnp.dtype(jnp.float32)
                     else lax.Precision.DEFAULT)

    # Fuse all weights along Cout: the dominant patches HBM stream is
    # amortised over a wider lane-dense output (fills the 256-wide MXU N dim
    # on v6e/v7x as more irreps are batched).
    wmat = jnp.concatenate(
        [wt.reshape(cout, kd).T for wt in weights], axis=1).astype(cdt)
    if bias is None:
        bvec = jnp.zeros((1, nw * cout), jnp.float32)
    else:
        bvec = jnp.tile(bias.reshape(1, cout).astype(jnp.float32), (1, nw))

    out = _gemm_bias_pallas(patches.astype(cdt), wmat, bvec, x.dtype,
                            precision=precision)          # (M, cout_p)

    outs = []
    for i in range(nw):
        o = out[:, i * cout:(i + 1) * cout]   # slice fuses into relayout below
        if out_layout == "NHWC":
            outs.append(o.reshape(n, oh, ow, cout))
        else:
            # TODO(synk): NHWC / token-stream consumers should pass
            # out_layout="NHWC" and skip this extra HBM relayout.
            outs.append(o.reshape(n, oh, ow, cout).transpose(0, 3, 1, 2))
    return outs


# ----------------------------------------------------------------------------
# Module replica
# ----------------------------------------------------------------------------
class LiftIrrepD8Conv2d:
    def __init__(self, in_channels, out_channels, kernel_size, stride, bias,
                 irrep="A1", *, key, compute_dtype=None, out_layout="NCHW"):
        if irrep not in ["A1", "A2", "B1", "B2", "E"]:
            raise ValueError("Invalid irrep.")
        if bias and irrep != "A1":
            raise ValueError("Bias only ok for A1-irrep.")
        kernel_size = _to_2tuple(kernel_size)
        if kernel_size[0] != kernel_size[1]:
            raise NotImplementedError("Non-square kernels not implemented")
        if kernel_size[0] % 2 != 0 or kernel_size[1] % 2 != 0:
            raise NotImplementedError("Odd kernel sizes not yet implemented")
        if (kernel_size[0] == 2 or kernel_size[1] == 2) and irrep in ["A2", "B1"]:
            raise ValueError(f"No {irrep} irrep in filter kernels of size 2.")
        self.kernel_size = kernel_size
        self.stride = stride
        self.irrep = irrep
        self.compute_dtype = compute_dtype
        self.out_layout = out_layout

        k2 = kernel_size[0] // 2
        fan_in = in_channels * k2 * k2
        bound = 1.0 / math.sqrt(fan_in)  # kaiming_uniform_(a=sqrt(5)) bound
        kw_key, kb_key = jax.random.split(key)
        self.weight = jax.random.uniform(
            kw_key, (out_channels, in_channels, k2, k2), jnp.float32, -bound, bound)
        self.bias = (
            jax.random.uniform(kb_key, (out_channels,), jnp.float32, -bound, bound)
            if bias else None)

    def __call__(self, x):
        weight = expand_weight(self.weight, self.irrep)
        if self.irrep == "E":
            w_rot = jnp.rot90(weight, k=1, axes=(-2, -1))
            # Fused: one pallas_call with 2*Cout on the lane dim.
            o1, o2 = conv2d_pallas(x, [weight, w_rot], self.bias, self.stride,
                                   compute_dtype=self.compute_dtype,
                                   out_layout=self.out_layout)
            return o1, o2
        (out,) = conv2d_pallas(x, [weight], self.bias, self.stride,
                               compute_dtype=self.compute_dtype,
                               out_layout=self.out_layout)
        return out


# ----------------------------------------------------------------------------
# Pure-JAX reference (for correctness check only)
# ----------------------------------------------------------------------------
def _conv_ref(x, w, b, stride):
    out = lax.conv_general_dilated(
        x, w, (stride, stride), "VALID",
        dimension_numbers=("NCHW", "OIHW", "NCHW"),
        precision=lax.Precision.HIGHEST)
    if b is not None:
        out = out + b.reshape(1, -1, 1, 1)
    return out


if __name__ == "__main__":
    key = jax.random.PRNGKey(0)
    kx, kmod_a1, kmod_e = jax.random.split(key, 3)

    N, Cin, H, W = 2, 4, 16, 16
    Cout, K, stride = 32, 4, 4
    x = jax.random.normal(kx, (N, Cin, H, W), jnp.float32)

    # --- A1 irrep with bias (patchify fast path) ---
    mod_a1 = LiftIrrepD8Conv2d(Cin, Cout, K, stride, bias=True, irrep="A1",
                               key=kmod_a1)
    out_a1 = jax.jit(lambda v: mod_a1(v))(x)
    jax.block_until_ready(out_a1)
    ref_a1 = _conv_ref(x, expand_weight(mod_a1.weight, "A1"), mod_a1.bias, stride)
    assert out_a1.shape == (N, Cout, H // stride, W // stride)
    assert jnp.allclose(out_a1, ref_a1, atol=1e-4, rtol=1e-4)

    # --- E irrep (fused pair of convs, no bias) ---
    mod_e = LiftIrrepD8Conv2d(Cin, Cout, K, stride, bias=False, irrep="E",
                              key=kmod_e)
    out_e1, out_e2 = jax.jit(lambda v: mod_e(v))(x)
    jax.block_until_ready((out_e1, out_e2))
    we = expand_weight(mod_e.weight, "E")
    ref_e1 = _conv_ref(x, we, None, stride)
    ref_e2 = _conv_ref(x, jnp.rot90(we, k=1, axes=(-2, -1)), None, stride)
    assert jnp.allclose(out_e1, ref_e1, atol=1e-4, rtol=1e-4)
    assert jnp.allclose(out_e2, ref_e2, atol=1e-4, rtol=1e-4)

    # --- non-patchify stride path (stride != k), A2 irrep, ragged M tiles ----
    mod_a2 = LiftIrrepD8Conv2d(Cin, Cout, K, 2, bias=False, irrep="A2",
                               key=kmod_a1)
    out_a2 = jax.jit(lambda v: mod_a2(v))(x)
    jax.block_until_ready(out_a2)
    ref_a2 = _conv_ref(x, expand_weight(mod_a2.weight, "A2"), None, 2)
    assert jnp.allclose(out_a2, ref_a2, atol=1e-4, rtol=1e-4)

    print("KERNEL_OK")
</pallas_src>

<mosaic_0001>
module attributes {stable_mosaic.version = 11 : i64} {
  func.func @_gemm_bias_kernel(%arg0: i32, %arg1: memref<8x64xf32, #tpu.memory_space<vmem>>, %arg2: memref<64x128xf32, #tpu.memory_space<vmem>>, %arg3: memref<1x128xf32, #tpu.memory_space<vmem>>, %arg4: memref<8x128xf32, #tpu.memory_space<vmem>>) attributes {dimension_semantics = [#tpu.dimension_semantics<parallel>], iteration_bounds = array<i64: 4>, scalar_prefetch = 0 : i64, scratch_operands = 0 : i64, tpu.core_type = #tpu.core_type<tc>, window_params = [{transform_indices = @transform_0, window_bounds = array<i64: 8, 64>}, {pipeline_mode = #tpu.pipeline_mode<synchronous>, transform_indices = @transform_1, window_bounds = array<i64: 64, 128>}, {pipeline_mode = #tpu.pipeline_mode<synchronous>, transform_indices = @transform_2, window_bounds = array<i64: 1, 128>}, {transform_indices = @transform_3, window_bounds = array<i64: 8, 128>}]} {
    %c0 = arith.constant 0 : index
    %c0_0 = arith.constant 0 : index
    %0 = vector.load %arg1[%c0, %c0_0] : memref<8x64xf32, #tpu.memory_space<vmem>>, vector<8x64xf32>
    %c0_1 = arith.constant 0 : index
    %c0_2 = arith.constant 0 : index
    %1 = vector.load %arg2[%c0_1, %c0_2] : memref<64x128xf32, #tpu.memory_space<vmem>>, vector<64x128xf32>
    %cst = arith.constant dense<0.000000e+00> : vector<8x128xf32>
    %2 = tpu.matmul %0, %1, %cst {dimension_numbers = #tpu.dot_dimension_numbers<[1], [0], [0], [1], [0, 0, 1, 1], [], []>, precision = #tpu.contract_precision<fp32>} : vector<8x64xf32>, vector<64x128xf32>, vector<8x128xf32> -> vector<8x128xf32>
    %c0_3 = arith.constant 0 : index
    %c0_4 = arith.constant 0 : index
    %3 = vector.load %arg3[%c0_3, %c0_4] : memref<1x128xf32, #tpu.memory_space<vmem>>, vector<1x128xf32>
    %4 = vector.broadcast %3 : vector<1x128xf32> to vector<8x128xf32>
    %5 = arith.addf %2, %4 : vector<8x128xf32>
    %c0_5 = arith.constant 0 : index
    %c0_6 = arith.constant 0 : index
    %6 = vector.load %arg4[%c0_5, %c0_6] : memref<8x128xf32, #tpu.memory_space<vmem>>, vector<8x128xf32>
    tpu.vector_store %arg4[%c0_5, %c0_6], %5 {strides = array<i32>} : memref<8x128xf32, #tpu.memory_space<vmem>>, vector<8x128xf32>,
    return
  }
  func.func @transform_0(%arg0: i32) -> (i32, i32) {
    %c0_i32 = arith.constant 0 : i32
    %c0_i32_0 = arith.constant 0 : i32
    return %arg0, %c0_i32 : i32, i32
  }
  func.func @transform_1(%arg0: i32) -> (i32, i32) {
    %c0_i32 = arith.constant 0 : i32
    %c0_i32_0 = arith.constant 0 : i32
    %c0_i32_1 = arith.constant 0 : i32
    return %c0_i32, %c0_i32_0 : i32, i32
  }
  func.func @transform_2(%arg0: i32) -> (i32, i32) {
    %c0_i32 = arith.constant 0 : i32
    %c0_i32_0 = arith.constant 0 : i32
    %c0_i32_1 = arith.constant 0 : i32
    return %c0_i32, %c0_i32_0 : i32, i32
  }
  func.func @transform_3(%arg0: i32) -> (i32, i32) {
    %c0_i32 = arith.constant 0 : i32
    %c0_i32_0 = arith.constant 0 : i32
    return %arg0, %c0_i32 : i32, i32
  }
}

</mosaic_0001>

<bundles_post_ra>
// kernel: _lambda_.1
= control target key start
LH: loop header
LB: loop body
LE: loop exit
PB: predicated region body
PF: predicated region fallthrough
CT: control target
= control target key end

     0   :  { %8 = vsyncpa [#allocation3], 0  ;;  %s1422_s0 = inlined_call_operand.vmem [shape: f32[32,64], index: 0, kind: input, shape index: {}]   ;;  %s1423_s1 = inlined_call_operand.vmem [shape: f32[64,128], index: 1, kind: input, shape index: {}]   ;;  %s1424_s2 = inlined_call_operand.vmem [shape: f32[1,128], index: 2, kind: input, shape index: {}]   ;;  %s1425_s3 = inlined_call_operand.hbm [shape: f32[32,128], index: 3, kind: output, shape index: {}]  }
   0x1   :  { %10 = vsyncpa [#allocation3 + $0x1], 0  ;;  %s1188_s12 = smov 0   ;;  %s1190_s13 = smov 0  }
   0x2   :  { %s1192_s14 = smov 0   ;;  %s1194_s15 = smov 0  }
   0x3 LB: > { %s1209_s16 = sadd.s32 4294967295, %s1162_s15   ;;  %s797_s17 = sadd.s32 4294967294, %s1162_s15   ;;  %s1162_s15 = sphi %s1194_s15, %s1431_s15   ;;  %s1158_s14 = sphi %s1192_s14, %s1430_s14   ;;  %s1154_s13 = sphi %s1190_s13, %s1429_s13   ;;  %s1150_s12 = sphi %s1188_s12, %s1428_s12  }
   0x4   : > { %s1213_s18 = sadd.s32 1, %s1162_s15   ;;  %s91_s19 = sadd.s32 1, %s1158_s14 }
   0x5   : > { %s88_s20 = ssub.s32 %s1162_s15, %s1213_s18  ;;  %p101_p0 = scmp.ne.s32.totalorder %s1158_s14, %s1154_s13 }
   0x6   : > { %p89_p1 = scmp.eq.s32.totalorder %s88_s20, 0  ;;  %p102_p2 = scmp.eq.s32.totalorder %s1209_s16, 3 }
   0x7   : > { %p107_p3 = scmp.ne.s32.totalorder %s1154_s13, %s1150_s12  ;;  %p108_p4 = scmp.eq.s32.totalorder %s797_s17, 3 }
   0x8   : > { %s1224_s21 = scalar_select %p89_p1, %s1158_s14, %s91_s19  }
   0x9   : > { %p1226_p5 = por %p102_p2, %p101_p0  ;;  %p1230_p6 = por %p108_p4, %p107_p3 }
   0xa   : > { %p800_p7 = scmp.ge.s32.totalorder %s1162_s15, 1  ;;  %p139_p8 = scmp.lt.s32.totalorder %s1162_s15, 5 }
   0xc   : > { %p140_p9 = pnand %p800_p7, %p139_p8 }
   0xd   : > { %v167_v0 = vld [vmem:[%s1423_s1] sm:$0xff] (!%p140_p9)  ;;  %v168_v1 = vld [vmem:[%s1423_s1 + $0x8] sm:$0xff] (!%p140_p9)  ;;  %v169_v2 = vld [vmem:[%s1423_s1 + $0x10] sm:$0xff] (!%p140_p9)  ;;  %v1164_v3 = vmov (!%p140_p9), 0.0|0.0   ;;  %vm1165_vm0 = vmmov (!%p140_p9), 0   ;;  %v1166_v11 = vmov (!%p140_p9), 0.0  }
   0xe   : > { %143 = sbr.rel (%p140_p9) target bundleno = 299 (0x12b), region = 32  ;;  %976 = vmatprep.subr.bf16.mxu1 (!%p140_p9), %v1164_v3  ;;  %1012 = vmatprep.subr.bf16.mxu0 (!%p140_p9), %v1164_v3  ;;  %v187_v4 = vand.u32 (!%p140_p9), 4294901760, %v167_v0  ;;  %v190_v5 = vand.u32 (!%p140_p9), 4294901760, %v168_v1  ;;  %v170_v6 = vld [vmem:[%s1423_s1 + $0x18] sm:$0xff] (!%p140_p9)  ;;  %v193_v7 = vand.u32 (!%p140_p9), 4294901760, %v169_v2  ;;  %v171_v8 = vld [vmem:[%s1423_s1 + $0x20] sm:$0xff] (!%p140_p9) }
   0xf   : > { %v172_v9 = vld [vmem:[%s1423_s1 + $0x28] sm:$0xff] (!%p140_p9)  ;;  %v196_v10 = vand.u32 (!%p140_p9), 4294901760, %v170_v6  ;;  %878 = vmatprep.mubr.msk.f32.mxu1 (!%p140_p9), %vm1165_vm0, %v1166_v11  ;;  %935 = vmatprep.mubr.msk.f32.mxu0 (!%p140_p9), %vm1165_vm0, %v1166_v11  ;;  %p162_p10 = scmp.lt.s32.totalorder (!%p140_p9), %s1209_s16, 3  ;;  %v199_v17 = vand.u32 (!%p140_p9), 4294901760, %v171_v8  ;;  %v173_v19 = vld [vmem:[%s1423_s1 + $0x30] sm:$0xff] (!%p140_p9)  ;;  %v174_v20 = vld [vmem:[%s1423_s1 + $0x38] sm:$0xff] (!%p140_p9) }
  0x10   : > { %v1261_v12 = vpack.c.bf16 (!%p140_p9), %v190_v5, %v187_v4  ;;  %v1263_v13 = vsub.f32 (!%p140_p9), %v167_v0, %v187_v4  ;;  %v1265_v14 = vsub.f32 (!%p140_p9), %v168_v1, %v190_v5  ;;  %v1267_v15 = vsub.f32 (!%p140_p9), %v169_v2, %v193_v7  ;;  %s159_s27 = sand.u32 (!%p140_p9), 1, %s1154_s13   ;;  %s805_s4 = sshll.u32 (!%p140_p9), %s1209_s16, 7 }
  0x11   : > { %v1269_v16 = vsub.f32 (!%p140_p9), %v170_v6, %v196_v10  ;;  %v202_v18 = vand.u32 (!%p140_p9), 4294901760, %v172_v9  ;;  %v1280_v21 = vpack.c.bf16 (!%p140_p9), %v196_v10, %v193_v7  ;;  %vm182_vm1 = vcmask (!%p140_p9), 523264   ;;  %s801_s28 = sshll.u32 (!%p140_p9), %s159_s27, 3  ;;  %v803_v10 = vld [vmem:[%s1424_s2] ss:$0 sm:$0xff] (!%p140_p9)  ;;  %s1380_s9 = scalar_lea.hbm (!%p140_p9), %s1425_s3, %s805_s4 }
  0x12   : > { %978 = vmatpush3.bf16.msra.mxu1 (!%p140_p9), %v1261_v12  ;;  %1014 = vmatpush3.bf16.msra.mxu0 (!%p140_p9), %v1261_v12  ;;  %v272_v22 = vand.u32 (!%p140_p9), 4294901760, %v1263_v13  ;;  %v279_v23 = vand.u32 (!%p140_p9), 4294901760, %v1265_v14  ;;  %v205_v24 = vand.u32 (!%p140_p9), 4294901760, %v173_v19  ;;  %v208_v25 = vand.u32 (!%p140_p9), 4294901760, %v174_v20  ;;  %s161_s5 = scalar_lea.vmem (!%p140_p9), [#allocation2], %s801_s28  ;;  %s725_s10 = scalar_lea.sflag (!%p140_p9), [#allocation3], %s159_s27 }
  0x13   : > { %979 = vmatprep.subr.bf16.mxu1 (!%p140_p9), %v1164_v3  ;;  %1015 = vmatprep.subr.bf16.mxu0 (!%p140_p9), %v1164_v3  ;;  %v1289_v26 = vpack.c.bf16 (!%p140_p9), %v202_v18, %v199_v17  ;;  %v1291_v27 = vsub.f32 (!%p140_p9), %v171_v8, %v199_v17  ;;  %v286_v29 = vand.u32 (!%p140_p9), 4294901760, %v1267_v15  ;;  %v293_v30 = vand.u32 (!%p140_p9), 4294901760, %v1269_v16  ;;  %s738_s6 = sshll.u32 (!%p140_p9), %s161_s5, 4  ;;  %s1382_s6 = int_to_ptr.vmem [resolvable:$true] %s738_s6 }
  0x14   : > { %v1297_v31 = vsub.f32 (!%p140_p9), %v172_v9, %v202_v18  ;;  %v273_v33 = vsub.f32 (!%p140_p9), %v1263_v13, %v272_v22  ;;  %v280_v34 = vsub.f32 (!%p140_p9), %v1265_v14, %v279_v23  ;;  %v1305_v36 = vpack.c.bf16 (!%p140_p9), %v208_v25, %v205_v24  ;;  %s1100_s11 = scalar_lea.vmem (!%p140_p9), %s1382_s6, 128 }
  0x15   : > { %s163_s19 = scalar_select %p162_p10, %s1209_s16, 3  ;;  %v1307_v37 = vsub.f32 %v173_v19, %v205_v24  ;;  %v287_v39 = vsub.f32 %v1267_v15, %v286_v29  ;;  %v294_v40 = vsub.f32 %v1269_v16, %v293_v30  ;;  %v300_v41 = vand.u32 4294901760, %v1291_v27 }
  0x16   : > { %981 = vmatpush3.bf16.msra.mxu1 %v1280_v21  ;;  %1017 = vmatpush3.bf16.msra.mxu0 %v1280_v21  ;;  %v1317_v42 = vsub.f32 %v174_v20, %v208_v25  ;;  %v274_v43 = vand.u32 4294901760, %v273_v33  ;;  %v281_v44 = vand.u32 4294901760, %v280_v34  ;;  %v307_v45 = vand.u32 4294901760, %v1297_v31  ;;  %p1101_p11 = scmp.ne.s32.totalorder %s1382_s6, %s1100_s11  ;;  %s1167_s16 = smov [#allocation2]  }
  0x17   : > { %s802_s20 = sshll.u32 %s163_s19, 3  ;;  %982 = vmatprep.subr.bf16.mxu1 %v1164_v3  ;;  %1018 = vmatprep.subr.bf16.mxu0 %v1164_v3  ;;  %v1025_v47 = vpack.c.bf16 %v279_v23, %v272_v22  ;;  %v288_v49 = vand.u32 4294901760, %v287_v39  ;;  %v295_v50 = vand.u32 4294901760, %v294_v40  ;;  %v301_v51 = vsub.f32 %v1291_v27, %v300_v41  ;;  %s1104_s17 = sshll.u32 %s1167_s16, 4  ;;  %s1105_s17 = int_to_ptr.vmem [resolvable:$false] %s1104_s17 }
  0x18   : > { %s165_s26 = scalar_lea.vmem %s1422_s0, %s802_s20  ;;  %v989_v52 = vpack.c.bf16 %v281_v44, %v274_v43  ;;  %v308_v53 = vsub.f32 %v1297_v31, %v307_v45  ;;  %v314_v54 = vand.u32 4294901760, %v1307_v37  ;;  %v321_v55 = vand.u32 4294901760, %v1317_v42  ;;  %p1102_p12 = pnand %p1101_p11, %p1226_p5 }
  0x19   : > { %v166_v28 = vld [vmem:[%s165_s26] sm:$0xff]  ;;  %v1028_v57 = vpack.c.bf16 %v293_v30, %v286_v29  ;;  %v302_v58 = vand.u32 4294901760, %v301_v51  ;;  %v992_v59 = vpack.c.bf16 %v295_v50, %v288_v49  ;;  %v1031_v0 = vpack.c.bf16 %v307_v45, %v300_v41  ;;  %s1106_s19 = scalar_lea.vmem %s1105_s17, 256  ;;  %p1107_p0 = scmp.lt.s32.totalorder %s1382_s6, %s1105_s17 }
  0x1a   : > { %v184_v32 = vsel %vm182_vm1, %v166_v28, 0  ;;  %984 = vmatpush3.bf16.msra.mxu1 %v1289_v26  ;;  %1020 = vmatpush3.bf16.msra.mxu0 %v1289_v26  ;;  %v309_v60 = vand.u32 4294901760, %v308_v53  ;;  %v315_v61 = vsub.f32 %v1307_v37, %v314_v54  ;;  %v322_v62 = vsub.f32 %v1317_v42, %v321_v55  ;;  %p1103_p13 = pneg %p1102_p12  ;;  %p1108_p1 = scmp.lt.s32.totalorder %s1106_s19, %s1100_s11 }
  0x1b   : > { %v1303_v35 = vand.u32 4294901760, %v184_v32  ;;  %985 = vmatprep.subr.bf16.mxu1 %v1164_v3  ;;  %1021 = vmatprep.subr.bf16.mxu0 %v1164_v3  ;;  %v1034_v5 = vpack.c.bf16 %v321_v55, %v314_v54  ;;  %v1001_v6 = vpack.c.bf16 %v1265_v14, %v1263_v13  ;;  %v1004_v7 = vpack.c.bf16 %v1269_v16, %v1267_v15 }
  0x1c   : > { %v995_v63 = vpack.c.bf16 %v309_v60, %v302_v58  ;;  %v316_v1 = vand.u32 4294901760, %v315_v61  ;;  %v323_v2 = vand.u32 4294901760, %v322_v62  ;;  %v1007_v8 = vpack.c.bf16 %v1297_v31, %v1291_v27  ;;  %p1109_p2 = por %p1108_p1, %p1107_p0 }
  0x1d   : > { %v1310_v38 = vsub.f32 %v184_v32, %v1303_v35  ;;  %v1010_v9 = vpack.c.bf16 %v1317_v42, %v1307_v37 }
  0x1e   : > { %987 = vmatpush3.bf16.msra.mxu1 %v1305_v36  ;;  %1023 = vmatpush3.bf16.msra.mxu0 %v1305_v36  ;;  %v998_v4 = vpack.c.bf16 %v323_v2, %v316_v1  ;;  %p1110_p3 = pnand %p1109_p2, %p1103_p13 }
  0x1f   : > { %v261_v46 = vand.u32 4294901760, %v1310_v38  ;;  %988 = vmatprep.subr.bf16.mxu1 %v1164_v3  ;;  %1024 = vmatprep.subr.bf16.mxu0 %v1164_v3 }
  0x21   : > { %v262_v48 = vsub.f32 %v1310_v38, %v261_v46  ;;  %936 = vmatmul.mubr.f32.vlgmr.msra.gmra.mrb[0].mxu0 %v261_v46 }
  0x22   : > { %1026 = vmatpush3.bf16.msra.mxu0 %v1025_v47  ;;  %954 = vmatprep.mubr.msk.f32.mxu0 %vm1165_vm0, %v1166_v11 }
  0x23   : > { %v263_v56 = vand.u32 4294901760, %v262_v48  ;;  %1027 = vmatprep.subr.bf16.mxu0 %v1164_v3 }
  0x25   : > { %879 = vmatmul.mubr.f32.vlgmr.msra.gmra.mrb[0].mxu1 %v263_v56 }
  0x26   : > { %990 = vmatpush3.bf16.msra.mxu1 %v989_v52  ;;  %897 = vmatprep.mubr.msk.f32.mxu1 %vm1165_vm0, %v1166_v11 }
  0x27   : > { %991 = vmatprep.subr.bf16.mxu1 %v1164_v3  ;;  %1029 = vmatpush3.bf16.msra.mxu0 %v1028_v57 }
  0x28   : > { %1030 = vmatprep.subr.bf16.mxu0 %v1164_v3 }
  0x2a   : > { %993 = vmatpush3.bf16.msra.mxu1 %v992_v59 }
  0x2b   : > { %994 = vmatprep.subr.bf16.mxu1 %v1164_v3  ;;  %1032 = vmatpush3.bf16.msra.mxu0 %v1031_v0 }
  0x2c   : > { %1033 = vmatprep.subr.bf16.mxu0 %v1164_v3 }
  0x2e   : > { %996 = vmatpush3.bf16.msra.mxu1 %v995_v63 }
  0x2f   : > { %997 = vmatprep.subr.bf16.mxu1 %v1164_v3  ;;  %1035 = vmatpush3.bf16.msra.mxu0 %v1034_v5 }
  0x30   : > { %1036 = vmatprep.subr.bf16.mxu0 %v1164_v3 }
  0x32   : > { %999 = vmatpush3.bf16.msra.mxu1 %v998_v4  ;;  %955 = vmatmul.mubr.f32.vlgmr.msra.gmra.mrb[0].mxu0 %v1303_v35 }
  0x33   : > { %1000 = vmatprep.subr.bf16.mxu1 %v1164_v3  ;;  %1038 = vmatpush3.bf16.msra.mxu0 %v1261_v12 }
  0x34   : > { %1039 = vmatprep.subr.bf16.mxu0 %v1164_v3  ;;  %973 = vmatprep.mubr.msk.f32.mxu0 %vm1165_vm0, %v1166_v11 }
  0x35   : > { %898 = vmatmul.mubr.f32.vlgmr.msra.gmra.mrb[0].mxu1 %v1303_v35 }
  0x36   : > { %1002 = vmatpush3.bf16.msra.mxu1 %v1001_v6  ;;  %916 = vmatprep.mubr.msk.f32.mxu1 %vm1165_vm0, %v1166_v11 }
  0x37   : > { %1003 = vmatprep.subr.bf16.mxu1 %v1164_v3  ;;  %1041 = vmatpush3.bf16.msra.mxu0 %v1280_v21 }
  0x38   : > { %1042 = vmatprep.subr.bf16.mxu0 %v1164_v3 }
  0x3a   : > { %1005 = vmatpush3.bf16.msra.mxu1 %v1004_v7 }
  0x3b   : > { %1006 = vmatprep.subr.bf16.mxu1 %v1164_v3  ;;  %1044 = vmatpush3.bf16.msra.mxu0 %v1289_v26 }
  0x3c   : > { %1045 = vmatprep.subr.bf16.mxu0 %v1164_v3 }
  0x3e   : > { %1008 = vmatpush3.bf16.msra.mxu1 %v1007_v8 }
  0x3f   : > { %1009 = vmatprep.subr.bf16.mxu1 %v1164_v3  ;;  %1047 = vmatpush3.bf16.msra.mxu0 %v1305_v36 }
  0x42   : > { %1011 = vmatpush3.bf16.msra.mxu1 %v1010_v9  ;;  %974 = vmatmul.mubr.f32.vlgmr.msra.gmra.mrb[0].mxu0 %v1303_v35 }
  0x45   : > { %917 = vmatmul.mubr.f32.vlgmr.msra.gmra.mrb[0].mxu1 %v1310_v38 }
 0x115   : > { %v719_v12 = vpop.f32.mrb[0].mxu0 }
 0x116   : > { %v975_v14 = vpop.f32.mrb[1].mxu0 }
 0x118   : > { %v464_v11 = vpop.f32.mrb[0].mxu1 }
 0x119   : > { %v1048_v3 = vadd.f32 %v803_v10, %v464_v11  ;;  %v918_v13 = vpop.f32.mrb[1].mxu1 }
 0x11b   : > { %v1049_v15 = vadd.f32 %v1048_v3, %v719_v12 }
 0x11d   : > { %723 = vst [vmem:[%s161_s5] sm:$0xff] %v1049_v15 }
 0x11e   : > { %1113 = shalt.err (!%p1110_p3)
}
 0x11f   : > { %s1114_s20 = scalar_lea.hbm %s1380_s9, 128  ;;  %s1118_s26 = scalar_lea.hbm %s1425_s3, 512 }
 0x120   : > { %p1115_p4 = scmp.ne.s32.totalorder %s1380_s9, %s1114_s20  ;;  %p1119_p9 = scmp.lt.u32.totalorder %s1380_s9, %s1425_s3 }
 0x121   : > { %p1120_p10 = scmp.lt.u32.totalorder %s1118_s26, %s1114_s20  ;;  %p1122_p12 = scmp.lt.u32.totalorder %s1114_s20, %s1380_s9 }
 0x122   : > { %p1116_p7 = pnand %p1115_p4, %p1226_p5 }
 0x123   : > { %p1121_p11 = por %p1120_p10, %p1119_p9 }
 0x124   : > { %p1117_p8 = pneg %p1116_p7 }
 0x125   : > { %p1123_p13 = por %p1122_p12, %p1121_p11 }
 0x127   : > { %p1124_p0 = pnand %p1123_p13, %p1117_p8 }
 0x129   : > { %1127 = shalt.err (!%p1124_p0)
}
 0x12a   : > { %1058 = dma.vmem_to_hbm [thread:$0]  (%p1226_p5), %s1382_s6, 128, %s1380_s9, %s725_s10  }
 0x12b PF: > { %p1064_p1 = scmp.ge.s32.totalorder %s1162_s15, 2  ;;  %s750_s29 = sand.u32 1, %s1150_s12  }
 0x12c   : > { %s751_s30 = scalar_lea.sflag [#allocation3], %s750_s29 }
 0x12d   : > { %p1061_p2 = pnand %p1064_p1, %p1230_p6 }
 0x12f   : > { %1145 = dma.done.wait (!%p1061_p2), %s751_s30, 128  }
 0x130   : > { %1147 = vsyncadd (!%p1061_p2), %s751_s30, 4294967168  ;;  %p13_p3 = scmp.ge.s32.totalorder %s1213_s18, 6   ;;  %s1428_s12 = smov %s1154_s13 }
 0x131   : > { %s1429_s13 = smov %s1158_s14  ;;  %s1430_s14 = smov %s1224_s21 }
 0x132   : > { %s1431_s15 = smov %s1213_s18  ;;  %15 = sbr.rel (!%p13_p3) target bundleno = 3 (0x3), region = 67 }
 0x139   :  { %756 = vsyncpa [#allocation3], 1 }
 0x13a   :  { %758 = vsyncpa [#allocation3 + $0x1], 1 }

</bundles_post_ra>
